<compile_context>
chip_gen: v7x
topology: tpu7x:2x2x1
jax: 0.10.0
libtpu: 0.0.40
codegen_flags: <defaults>
</compile_context>

<pallas_src>
import math

import jax
import jax.numpy as jnp
from jax.experimental import pallas as pl
from jax.experimental.pallas import tpu as pltpu

# ---------------- model config (small, consistent with MacGNN.__init__) ------
EMBED_DIM   = 8
HIDDEN_DIM  = 2 * EMBED_DIM            # NeighborAggregation(embed_dim, 2*embed_dim)
U_GROUP_NUM = 6 + 1                    # u_group_num + 1
I_GROUP_NUM = 5 + 1                    # i_group_num + 1
RECENT_LEN  = 8
TAU         = 0.8
FIELD_DIMS  = (50, 60, 10)             # (n_users, n_items, n_cates)
BATCH       = 8
MLP_H1, MLP_H2 = 200, 80
N_COLS = 2 + 2 * I_GROUP_NUM + 2 * U_GROUP_NUM + 2 * RECENT_LEN   # 44

# ---------------- derived kernel layout constants ----------------------------
MACRO_PAD = 8                              # per-group lane padding (>= max(Ni, Nu))
Z_EMB  = 2 * EMBED_DIM                     # 16  : [user_emb | item_emb]
Z_W    = 4 * MACRO_PAD                     # 32  : [u1_w | u2_w | i1_w | i2_w]
Z_REC  = 2 * RECENT_LEN * EMBED_DIM        # 128 : [ur_masked flat | ir_masked flat]
Z_DIM  = Z_EMB + Z_W + Z_REC               # 176
H1_PAD = 256                               # MLP_H1 = 200 padded to lane multiple
H2_PAD = 128                               # MLP_H2 = 80 padded to lane multiple
SLAB_W2_ROW = Z_DIM                        # 176
SLAB_B1_ROW = Z_DIM + H1_PAD               # 432 (8-aligned row)
SLAB_B2_ROW = SLAB_B1_ROW + 8              # 440
SLAB_W3_ROW = SLAB_B2_ROW + 8              # 448
SLAB_ROWS   = SLAB_W3_ROW + 8              # 456


# --------------------------------- kernel ------------------------------------
def _macgnn_kernel(
    cnt_ref,    # [4B, 8]    int32 : macro counts (u1|u2|i1|i2 stacked on axis 0, pad=-1)
    recid_ref,  # [B, 2*L*D] int32 : recent ids repeated D times (ur | ir); 0 = padding
    emb_ref,    # [B, 2*D]   f32   : [user_emb | item_emb]
    rec_ref,    # [B, 2*L*D] f32   : gathered recent embeddings, flattened (ur | ir)
    slab_ref,   # [456, 256] f32   : w1_eff | w2 | b1 | b2 | w3 row (lane-padded)
    scal_ref,   # SMEM (3,)  f32   : [b3, alpha1, alpha2]
    out_ref,    # [B, 1]     f32
):
    f32 = jnp.float32
    B = emb_ref.shape[0]

    # ---- four macro softmaxes as ONE vectorized chain over [4B, 8] -----------
    #      softmax(log(cnt + 1) / tau, dim=1); pad lanes (cnt = -1) get weight 0.
    cnt = cnt_ref[...].astype(f32)
    logits = jnp.where(cnt < 0.0, jnp.float32(-1e30),
                       jnp.log(jnp.maximum(cnt, 0.0) + 1.0) * (1.0 / TAU))
    m = jnp.max(logits, axis=1, keepdims=True)
    e = jnp.exp(logits - m)                                   # pads underflow to 0
    w_blk = e / jnp.sum(e, axis=1, keepdims=True)             # [4B, 8]

    # ---- recent sequences: mask only; L-sum + V projection folded into w1_eff
    rec_masked = rec_ref[...] * (recid_ref[...] > 0).astype(f32)      # [B, 128]

    # ---- assemble z (6-way concat) and run the fused MLP ---------------------
    z = jnp.concatenate(
        [emb_ref[...],
         w_blk[0:B], w_blk[B:2 * B], w_blk[2 * B:3 * B], w_blk[3 * B:4 * B],
         rec_masked],
        axis=1)                                                       # [B, 176]

    w1_eff = slab_ref[0:Z_DIM, :]                                     # [176, 256]
    w2     = slab_ref[SLAB_W2_ROW:SLAB_W2_ROW + H1_PAD, 0:H2_PAD]     # [256, 128]
    b1     = slab_ref[SLAB_B1_ROW:SLAB_B1_ROW + 1, :]                 # [1, 256]
    b2     = slab_ref[SLAB_B2_ROW:SLAB_B2_ROW + 1, 0:H2_PAD]          # [1, 128]
    w3_row = slab_ref[SLAB_W3_ROW:SLAB_W3_ROW + 1, 0:H2_PAD]          # [1, 128]
    b3 = scal_ref[0]
    a1 = scal_ref[1]
    a2 = scal_ref[2]

    def dice(h, alpha):                     # Dice(): alpha is a learned scalar
        avg = jnp.mean(h, axis=0, keepdims=True)
        var = jnp.sum((h - avg) ** 2, axis=0, keepdims=True) * (1.0 / (h.shape[0] - 1))
        inv_std = jax.lax.rsqrt(var + 1e-12)    # EUP rsqrt; eps kills 0-var NaN on pads
        p = jax.nn.sigmoid((h - avg) * inv_std + 1e-08)
        return h * p + alpha * h * (1.0 - p)

    h1 = jnp.dot(z, w1_eff, preferred_element_type=f32) + b1          # [B, 256]
    h1 = dice(h1, a1)
    h2 = jnp.dot(h1, w2, preferred_element_type=f32) + b2             # [B, 128]
    h2 = dice(h2, a2)
    # N=1 matmul replaced by elementwise mul + lane reduce (pad lanes are 0).
    h3 = jnp.sum(h2 * w3_row, axis=-1, keepdims=True) + b3            # [B, 1]
    # TODO(synk): switch to a lane-dense [1, B] output once the batch grid exists.
    out_ref[...] = jax.nn.sigmoid(h3)


# --------------------------------- param prep --------------------------------
def prepare_kernel_params(params):
    """One-time algebraic folding + packing of all constant kernel inputs."""
    D, H, L = EMBED_DIM, HIDDEN_DIM, RECENT_LEN
    Ni, Nu = I_GROUP_NUM, U_GROUP_NUM
    f32 = jnp.float32

    # Q/K/score path of NeighborAggregation is provably dead (softmax over a
    # size-1 dim == 1), so only the V projections survive.
    uV = params['u_Vw'].T.astype(f32)                  # [D, H]
    iV = params['i_Vw'].T.astype(f32)                  # [D, H]
    tV_u = params['u_macro_embed'].astype(f32) @ uV    # [Nu, H]
    tV_i = params['i_macro_embed'].astype(f32) @ iV    # [Ni, H]

    # Block matrix M : z [B, 176]  ->  concated [B, 112] (original hstack layout:
    #   0:8 user_emb | 8:24 u1_ws | 24:40 u2_ws | 40:56 ur_ws |
    #   56:64 item_emb | 64:80 i1_ws | 80:96 i2_ws | 96:112 ir_ws)
    M = jnp.zeros((Z_DIM, 14 * D), f32)
    M = M.at[0:D, 0:D].set(jnp.eye(D, dtype=f32))                       # user_emb
    M = M.at[D:2 * D, 7 * D:8 * D].set(jnp.eye(D, dtype=f32))           # item_emb
    o = Z_EMB
    M = M.at[o:o + Ni, D:D + H].set(tV_i);                 o += MACRO_PAD   # u1_ws
    M = M.at[o:o + Nu, D + H:D + 2 * H].set(tV_u);         o += MACRO_PAD   # u2_ws
    M = M.at[o:o + Nu, 8 * D:8 * D + H].set(tV_u);         o += MACRO_PAD   # i1_ws
    M = M.at[o:o + Ni, 8 * D + H:8 * D + 2 * H].set(tV_i); o += MACRO_PAD   # i2_ws
    M = M.at[o:o + L * D, D + 2 * H:D + 3 * H].set(jnp.tile(iV, (L, 1)))        # ur_ws
    o += L * D
    M = M.at[o:o + L * D, 8 * D + 2 * H:8 * D + 3 * H].set(jnp.tile(uV, (L, 1)))  # ir_ws

    w1_eff = M @ params['mlp_w1'].T.astype(f32)        # [176, 200]

    # Single lane-aligned constant slab (one DMA).  Padding columns/rows are 0.
    slab = jnp.zeros((SLAB_ROWS, H1_PAD), f32)
    slab = slab.at[0:Z_DIM, 0:MLP_H1].set(w1_eff)
    slab = slab.at[SLAB_W2_ROW:SLAB_W2_ROW + MLP_H1, 0:MLP_H2].set(
        params['mlp_w2'].T.astype(f32))
    slab = slab.at[SLAB_B1_ROW, 0:MLP_H1].set(params['mlp_b1'])
    slab = slab.at[SLAB_B2_ROW, 0:MLP_H2].set(params['mlp_b2'])
    slab = slab.at[SLAB_W3_ROW, 0:MLP_H2].set(params['mlp_w3'].reshape(-1))

    scal = jnp.concatenate(
        [params['mlp_b3'].reshape(-1),
         params['alpha1'].reshape(-1),
         params['alpha2'].reshape(-1)]).astype(f32)    # (3,)
    # TODO(synk): store slab weights in bf16 once a batch grid makes the MXU the
    # bottleneck; at B=8 the kernel is latency-bound and f32 is safer numerically.
    return {'slab': slab, 'scal': scal}


# --------------------------------- wrapper -----------------------------------
def macgnn_forward(params, kparams, x):
    B = x.shape[0]
    Ni, Nu, L, D = I_GROUP_NUM, U_GROUP_NUM, RECENT_LEN, EMBED_DIM

    # --- slice the raw int feature matrix (index glue) ------------------------
    user_ids = x[:, 0]
    u1_cnt   = x[:, 1:1 + Ni]
    u2_cnt   = x[:, 1 + Ni:1 + Ni + Nu]
    user_rec = x[:, 1 + Ni + Nu:1 + Ni + Nu + L]
    item_ids = x[:, 1 + Ni + Nu + L]
    i1_cnt   = x[:, 2 + Ni + Nu + L:2 + Ni + 2 * Nu + L]
    i2_cnt   = x[:, 2 + Ni + 2 * Nu + L:2 + 2 * Ni + 2 * Nu + L]
    item_rec = x[:, 2 + 2 * Ni + 2 * Nu + L:]

    # --- embedding gathers = glue (data-dependent gather stays outside) -------
    user_emb = params['user_embed'][user_ids]                   # [B, D]
    item_emb = params['item_embed'][item_ids]                   # [B, D]
    emb_cat  = jnp.concatenate([user_emb, item_emb], axis=1)    # [B, 2D]
    ur_flat  = params['item_embed'][user_rec].reshape(B, L * D) # [B, L*D]
    ir_flat  = params['user_embed'][item_rec].reshape(B, L * D) # [B, L*D]
    rec_flat = jnp.concatenate([ur_flat, ir_flat], axis=1)      # [B, 2*L*D]

    # --- lane-friendly int layouts for the kernel (layout glue only) ----------
    def _pad_group(c):                                  # [B, n] -> [B, 8] (pad = -1)
        return jnp.pad(c, ((0, 0), (0, MACRO_PAD - c.shape[1])), constant_values=-1)
    cnt_blk = jnp.concatenate(
        [_pad_group(u1_cnt), _pad_group(u2_cnt),
         _pad_group(i1_cnt), _pad_group(i2_cnt)], axis=0).astype(jnp.int32)   # [4B, 8]
    rec_ids = jnp.concatenate(
        [jnp.repeat(user_rec, D, axis=1), jnp.repeat(item_rec, D, axis=1)],
        axis=1).astype(jnp.int32)                                             # [B, 2*L*D]

    vmem = pl.BlockSpec(memory_space=pltpu.MemorySpace.VMEM)
    smem = pl.BlockSpec(memory_space=pltpu.MemorySpace.SMEM)
    return pl.pallas_call(
        _macgnn_kernel,
        out_shape=jax.ShapeDtypeStruct((B, 1), jnp.float32),
        in_specs=[vmem, vmem, vmem, vmem, vmem, smem],
        out_specs=vmem,
    )(cnt_blk, rec_ids, emb_cat.astype(jnp.float32), rec_flat.astype(jnp.float32),
      kparams['slab'], kparams['scal'])


# ----------------------- pure-JAX reference (for checking) -------------------
def macgnn_reference(params, x):
    Ni, Nu, L = I_GROUP_NUM, U_GROUP_NUM, RECENT_LEN
    D, H = EMBED_DIM, HIDDEN_DIM
    B = x.shape[0]

    user_emb = params['user_embed'][x[:, 0]]
    u1_cnt = x[:, 1:Ni + 1].astype(jnp.float32)
    u2_cnt = x[:, Ni + 1:Ni + Nu + 1].astype(jnp.float32)
    user_recent = x[:, Ni + Nu + 1:Ni + Nu + L + 1]
    item_emb = params['item_embed'][x[:, Ni + Nu + L + 1]]
    i1_cnt = x[:, Ni + Nu + L + 2:Ni + 2 * Nu + L + 2].astype(jnp.float32)
    i2_cnt = x[:, Ni + 2 * Nu + L + 2:2 * Ni + 2 * Nu + L + 2].astype(jnp.float32)
    item_recent = x[:, 2 * Ni + 2 * Nu + L + 2:]

    def agg(query, key_, Qw, Kw, Vw):
        tQ = query @ Qw.T
        tK = key_ @ Kw.T
        tV = query @ Vw.T
        score = jax.nn.softmax(jnp.matmul(tQ, jnp.swapaxes(tK, 1, 2)) / math.sqrt(H), axis=-1)
        return tV * score

    def mweight(cnt):
        return jax.nn.softmax(jnp.log(cnt + 1.0) / TAU, axis=1)[:, :, None]

    u_macro = jnp.broadcast_to(params['u_macro_embed'][None], (B, Nu, D))
    i_macro = jnp.broadcast_to(params['i_macro_embed'][None], (B, Ni, D))
    ur_emb = params['item_embed'][user_recent]
    ir_emb = params['user_embed'][item_recent]
    ur_mask = (user_recent > 0).astype(jnp.float32)[:, :, None]
    ir_mask = (item_recent > 0).astype(jnp.float32)[:, :, None]

    uQ, uK, uV = params['u_Qw'], params['u_Kw'], params['u_Vw']
    iQ, iK, iV = params['i_Qw'], params['i_Kw'], params['i_Vw']

    u1_ws = (agg(i_macro, item_emb[:, None, :], iQ, iK, iV) * mweight(u1_cnt)).sum(1)
    u2_ws = (agg(u_macro, user_emb[:, None, :], uQ, uK, uV) * mweight(u2_cnt)).sum(1)
    i1_ws = (agg(u_macro, user_emb[:, None, :], uQ, uK, uV) * mweight(i1_cnt)).sum(1)
    i2_ws = (agg(i_macro, item_emb[:, None, :], iQ, iK, iV) * mweight(i2_cnt)).sum(1)
    ur_ws = (agg(ur_emb, item_emb[:, None, :], iQ, iK, iV) * ur_mask).sum(1)
    ir_ws = (agg(ir_emb, user_emb[:, None, :], uQ, uK, uV) * ir_mask).sum(1)

    concated = jnp.concatenate(
        [user_emb, u1_ws, u2_ws, ur_ws, item_emb, i1_ws, i2_ws, ir_ws], axis=1)

    def dice(h, alpha):
        avg = h.mean(0)
        std = jnp.std(h, axis=0, ddof=1)
        p = jax.nn.sigmoid((h - avg) / std + 1e-08)
        return h * p + alpha * h * (1 - p)

    h = concated @ params['mlp_w1'].T + params['mlp_b1']
    h = dice(h, params['alpha1'])
    h = h @ params['mlp_w2'].T + params['mlp_b2']
    h = dice(h, params['alpha2'])
    h = h @ params['mlp_w3'].T + params['mlp_b3']
    return jax.nn.sigmoid(h)


# --------------------------------- init --------------------------------------
def init_params(key):
    D, H = EMBED_DIM, HIDDEN_DIM
    ks = iter(jax.random.split(key, 24))

    def xavier(k, shape):                         # torch.nn.init.xavier_uniform_
        fan_out, fan_in = shape
        a = math.sqrt(6.0 / (fan_in + fan_out))
        return jax.random.uniform(k, shape, jnp.float32, -a, a)

    def lin_w(k, out_f, in_f):                    # torch nn.Linear default init
        b = 1.0 / math.sqrt(in_f)
        return jax.random.uniform(k, (out_f, in_f), jnp.float32, -b, b)

    def lin_b(k, out_f, in_f):
        b = 1.0 / math.sqrt(in_f)
        return jax.random.uniform(k, (out_f,), jnp.float32, -b, b)

    return {
        'user_embed': xavier(next(ks), (FIELD_DIMS[0], D)),
        'item_embed': xavier(next(ks), (FIELD_DIMS[1], D)),
        'cate_embed': xavier(next(ks), (FIELD_DIMS[2], D)),   # unused in forward (as in PyTorch)
        'u_macro_embed': xavier(next(ks), (U_GROUP_NUM, D)),
        'i_macro_embed': xavier(next(ks), (I_GROUP_NUM, D)),
        'u_Qw': lin_w(next(ks), H, D), 'u_Kw': lin_w(next(ks), H, D), 'u_Vw': lin_w(next(ks), H, D),
        'i_Qw': lin_w(next(ks), H, D), 'i_Kw': lin_w(next(ks), H, D), 'i_Vw': lin_w(next(ks), H, D),
        'mlp_w1': lin_w(next(ks), MLP_H1, 14 * D), 'mlp_b1': lin_b(next(ks), MLP_H1, 14 * D),
        'mlp_w2': lin_w(next(ks), MLP_H2, MLP_H1), 'mlp_b2': lin_b(next(ks), MLP_H2, MLP_H1),
        'mlp_w3': lin_w(next(ks), 1, MLP_H2),      'mlp_b3': lin_b(next(ks), 1, MLP_H2),
        'alpha1': jnp.zeros((1,), jnp.float32),    # Dice.alpha init = zeros
        'alpha2': jnp.zeros((1,), jnp.float32),
    }


# --------------------------------- main --------------------------------------
if __name__ == "__main__":
    key = jax.random.PRNGKey(0)
    pkey, xkey = jax.random.split(key)
    params = init_params(pkey)
    kparams = prepare_kernel_params(params)   # one-time algebraic fold + packing

    Ni, Nu, L = I_GROUP_NUM, U_GROUP_NUM, RECENT_LEN
    ks = jax.random.split(xkey, 8)
    user_col = jax.random.randint(ks[0], (BATCH, 1), 0, FIELD_DIMS[0])
    u1 = jax.random.randint(ks[1], (BATCH, Ni), 0, 40)       # macro-neighbor counts
    u2 = jax.random.randint(ks[2], (BATCH, Nu), 0, 40)
    ur = jax.random.randint(ks[3], (BATCH, L), 0, FIELD_DIMS[1])   # recent item ids (0 = pad)
    item_col = jax.random.randint(ks[4], (BATCH, 1), 0, FIELD_DIMS[1])
    i1 = jax.random.randint(ks[5], (BATCH, Nu), 0, 40)
    i2 = jax.random.randint(ks[6], (BATCH, Ni), 0, 40)
    ir = jax.random.randint(ks[7], (BATCH, L), 0, FIELD_DIMS[0])   # recent user ids (0 = pad)
    x = jnp.concatenate([user_col, u1, u2, ur, item_col, i1, i2, ir], axis=1).astype(jnp.int32)
    assert x.shape == (BATCH, N_COLS)

    out = macgnn_forward(params, kparams, x)
    out = jax.block_until_ready(out)
    ref = macgnn_reference(params, x)

    assert out.shape == (BATCH, 1)
    assert bool(jnp.all(jnp.isfinite(out)))
    assert bool(jnp.allclose(out, ref, atol=2e-3, rtol=2e-3)), (out, ref)
    print("KERNEL_OK")
</pallas_src>

<mosaic_0001>
module attributes {stable_mosaic.version = 11 : i64} {
  func.func @_macgnn_kernel(%arg0: memref<32x8xi32, #tpu.memory_space<vmem>>, %arg1: memref<8x128xi32, #tpu.memory_space<vmem>>, %arg2: memref<8x16xf32, #tpu.memory_space<vmem>>, %arg3: memref<8x128xf32, #tpu.memory_space<vmem>>, %arg4: memref<456x256xf32, #tpu.memory_space<vmem>>, %arg5: memref<3xf32, #tpu.memory_space<smem>>, %arg6: memref<8x1xf32, #tpu.memory_space<vmem>>) attributes {dimension_semantics = [], scalar_prefetch = 0 : i64, scratch_operands = 0 : i64, tpu.core_type = #tpu.core_type<tc>} {
    %c0 = arith.constant 0 : index
    %c0_0 = arith.constant 0 : index
    %0 = vector.load %arg0[%c0, %c0_0] : memref<32x8xi32, #tpu.memory_space<vmem>>, vector<32x8xi32>
    %1 = arith.sitofp %0 : vector<32x8xi32> to vector<32x8xf32>
    %cst = arith.constant 0.000000e+00 : f32
    %2 = vector.broadcast %cst : f32 to vector<32x8xf32>
    %3 = arith.cmpf olt, %1, %2 : vector<32x8xf32>
    %cst_1 = arith.constant 0.000000e+00 : f32
    %4 = vector.broadcast %cst_1 : f32 to vector<32x8xf32>
    %5 = arith.maximumf %1, %4 : vector<32x8xf32>
    %cst_2 = arith.constant 1.000000e+00 : f32
    %6 = vector.broadcast %cst_2 : f32 to vector<32x8xf32>
    %7 = arith.addf %5, %6 : vector<32x8xf32>
    %8 = math.log %7 : vector<32x8xf32>
    %cst_3 = arith.constant 1.250000e+00 : f32
    %9 = vector.broadcast %cst_3 : f32 to vector<32x8xf32>
    %10 = arith.mulf %8, %9 : vector<32x8xf32>
    %cst_4 = arith.constant -1.000000e+30 : f32
    %11 = vector.broadcast %cst_4 : f32 to vector<32x8xf32>
    %12 = arith.select %3, %11, %10 : vector<32x8xi1>, vector<32x8xf32>
    %cst_5 = arith.constant dense<0xFF800000> : vector<32xf32>
    %13 = vector.multi_reduction <maximumf>, %12, %cst_5 [1] : vector<32x8xf32> to vector<32xf32>
    %14 = vector.shape_cast %13 : vector<32xf32> to vector<32x1xf32>
    %15 = vector.broadcast %14 : vector<32x1xf32> to vector<32x8xf32>
    %16 = arith.subf %12, %15 : vector<32x8xf32>
    %17 = math.exp %16 : vector<32x8xf32>
    %cst_6 = arith.constant dense<0.000000e+00> : vector<32xf32>
    %18 = vector.multi_reduction <add>, %17, %cst_6 [1] : vector<32x8xf32> to vector<32xf32>
    %19 = vector.shape_cast %18 : vector<32xf32> to vector<32x1xf32>
    %20 = vector.broadcast %19 : vector<32x1xf32> to vector<32x8xf32>
    %21 = arith.divf %17, %20 : vector<32x8xf32>
    %c0_7 = arith.constant 0 : index
    %c0_8 = arith.constant 0 : index
    %22 = vector.load %arg3[%c0_7, %c0_8] : memref<8x128xf32, #tpu.memory_space<vmem>>, vector<8x128xf32>
    %c0_9 = arith.constant 0 : index
    %c0_10 = arith.constant 0 : index
    %23 = vector.load %arg1[%c0_9, %c0_10] : memref<8x128xi32, #tpu.memory_space<vmem>>, vector<8x128xi32>
    %c0_i32 = arith.constant 0 : i32
    %24 = vector.broadcast %c0_i32 : i32 to vector<8x128xi32>
    %25 = arith.cmpi sgt, %23, %24 : vector<8x128xi32>
    %26 = arith.extui %25 : vector<8x128xi1> to vector<8x128xi32>
    %27 = arith.sitofp %26 : vector<8x128xi32> to vector<8x128xf32>
    %28 = arith.mulf %22, %27 : vector<8x128xf32>
    %c0_11 = arith.constant 0 : index
    %c0_12 = arith.constant 0 : index
    %29 = vector.load %arg2[%c0_11, %c0_12] : memref<8x16xf32, #tpu.memory_space<vmem>>, vector<8x16xf32>
    %30 = vector.extract_strided_slice %21 {offsets = [0, 0], sizes = [8, 8], strides = [1, 1]} : vector<32x8xf32> to vector<8x8xf32>
    %31 = vector.extract_strided_slice %21 {offsets = [8, 0], sizes = [8, 8], strides = [1, 1]} : vector<32x8xf32> to vector<8x8xf32>
    %32 = vector.extract_strided_slice %21 {offsets = [16, 0], sizes = [8, 8], strides = [1, 1]} : vector<32x8xf32> to vector<8x8xf32>
    %33 = vector.extract_strided_slice %21 {offsets = [24, 0], sizes = [8, 8], strides = [1, 1]} : vector<32x8xf32> to vector<8x8xf32>
    %34 = tpu.concatenate %29, %30, %31, %32, %33, %28 in 1 : vector<8x16xf32>, vector<8x8xf32>, vector<8x8xf32>, vector<8x8xf32>, vector<8x8xf32>, vector<8x128xf32> -> vector<8x176xf32>
    %c0_13 = arith.constant 0 : index
    %c0_14 = arith.constant 0 : index
    %35 = vector.load %arg4[%c0_13, %c0_14] : memref<456x256xf32, #tpu.memory_space<vmem>>, vector<176x256xf32>
    %c176 = arith.constant 176 : index
    %c0_15 = arith.constant 0 : index
    %36 = vector.load %arg4[%c176, %c0_15] : memref<456x256xf32, #tpu.memory_space<vmem>>, vector<256x128xf32>
    %c432 = arith.constant 432 : index
    %c0_16 = arith.constant 0 : index
    %37 = vector.load %arg4[%c432, %c0_16] : memref<456x256xf32, #tpu.memory_space<vmem>>, vector<1x256xf32>
    %c440 = arith.constant 440 : index
    %c0_17 = arith.constant 0 : index
    %38 = vector.load %arg4[%c440, %c0_17] : memref<456x256xf32, #tpu.memory_space<vmem>>, vector<1x128xf32>
    %c448 = arith.constant 448 : index
    %c0_18 = arith.constant 0 : index
    %39 = vector.load %arg4[%c448, %c0_18] : memref<456x256xf32, #tpu.memory_space<vmem>>, vector<1x128xf32>
    %c0_19 = arith.constant 0 : index
    %40 = memref.load %arg5[%c0_19] : memref<3xf32, #tpu.memory_space<smem>>
    %c1 = arith.constant 1 : index
    %41 = memref.load %arg5[%c1] : memref<3xf32, #tpu.memory_space<smem>>
    %c2 = arith.constant 2 : index
    %42 = memref.load %arg5[%c2] : memref<3xf32, #tpu.memory_space<smem>>
    %cst_20 = arith.constant dense<0.000000e+00> : vector<8x256xf32>
    %43 = tpu.matmul %34, %35, %cst_20 {dimension_numbers = #tpu.dot_dimension_numbers<[1], [0], [0], [1], [0, 0, 1, 1], [], []>} : vector<8x176xf32>, vector<176x256xf32>, vector<8x256xf32> -> vector<8x256xf32>
    %44 = vector.broadcast %37 : vector<1x256xf32> to vector<8x256xf32>
    %45 = arith.addf %43, %44 : vector<8x256xf32>
    %cst_21 = arith.constant dense<0.000000e+00> : vector<256xf32>
    %46 = vector.multi_reduction <add>, %45, %cst_21 [0] : vector<8x256xf32> to vector<256xf32>
    %47 = vector.shape_cast %46 : vector<256xf32> to vector<1x256xf32>
    %cst_22 = arith.constant 8.000000e+00 : f32
    %48 = vector.broadcast %cst_22 : f32 to vector<1x256xf32>
    %49 = arith.divf %47, %48 : vector<1x256xf32>
    %50 = vector.broadcast %49 : vector<1x256xf32> to vector<8x256xf32>
    %51 = arith.subf %45, %50 : vector<8x256xf32>
    %52 = arith.mulf %51, %51 : vector<8x256xf32>
    %cst_23 = arith.constant dense<0.000000e+00> : vector<256xf32>
    %53 = vector.multi_reduction <add>, %52, %cst_23 [0] : vector<8x256xf32> to vector<256xf32>
    %54 = vector.shape_cast %53 : vector<256xf32> to vector<1x256xf32>
    %cst_24 = arith.constant 0.142857149 : f32
    %55 = vector.broadcast %cst_24 : f32 to vector<1x256xf32>
    %56 = arith.mulf %54, %55 : vector<1x256xf32>
    %cst_25 = arith.constant 9.99999996E-13 : f32
    %57 = vector.broadcast %cst_25 : f32 to vector<1x256xf32>
    %58 = arith.addf %56, %57 : vector<1x256xf32>
    %59 = math.rsqrt %58 : vector<1x256xf32>
    %60 = vector.broadcast %49 : vector<1x256xf32> to vector<8x256xf32>
    %61 = arith.subf %45, %60 : vector<8x256xf32>
    %62 = vector.broadcast %59 : vector<1x256xf32> to vector<8x256xf32>
    %63 = arith.mulf %61, %62 : vector<8x256xf32>
    %cst_26 = arith.constant 9.99999993E-9 : f32
    %64 = vector.broadcast %cst_26 : f32 to vector<8x256xf32>
    %65 = arith.addf %63, %64 : vector<8x256xf32>
    %66 = arith.negf %65 : vector<8x256xf32>
    %67 = math.exp %66 : vector<8x256xf32>
    %cst_27 = arith.constant 1.000000e+00 : f32
    %68 = vector.broadcast %cst_27 : f32 to vector<8x256xf32>
    %69 = arith.addf %68, %67 : vector<8x256xf32>
    %70 = arith.divf %68, %69 : vector<8x256xf32>
    %71 = arith.mulf %45, %70 : vector<8x256xf32>
    %72 = vector.broadcast %41 : f32 to vector<8x256xf32>
    %73 = arith.mulf %72, %45 : vector<8x256xf32>
    %cst_28 = arith.constant 1.000000e+00 : f32
    %74 = vector.broadcast %cst_28 : f32 to vector<8x256xf32>
    %75 = arith.subf %74, %70 : vector<8x256xf32>
    %76 = arith.mulf %73, %75 : vector<8x256xf32>
    %77 = arith.addf %71, %76 : vector<8x256xf32>
    %cst_29 = arith.constant dense<0.000000e+00> : vector<8x128xf32>
    %78 = tpu.matmul %77, %36, %cst_29 {dimension_numbers = #tpu.dot_dimension_numbers<[1], [0], [0], [1], [0, 0, 1, 1], [], []>} : vector<8x256xf32>, vector<256x128xf32>, vector<8x128xf32> -> vector<8x128xf32>
    %79 = vector.broadcast %38 : vector<1x128xf32> to vector<8x128xf32>
    %80 = arith.addf %78, %79 : vector<8x128xf32>
    %cst_30 = arith.constant dense<0.000000e+00> : vector<128xf32>
    %81 = vector.multi_reduction <add>, %80, %cst_30 [0] : vector<8x128xf32> to vector<128xf32>
    %82 = vector.shape_cast %81 : vector<128xf32> to vector<1x128xf32>
    %cst_31 = arith.constant 8.000000e+00 : f32
    %83 = vector.broadcast %cst_31 : f32 to vector<1x128xf32>
    %84 = arith.divf %82, %83 : vector<1x128xf32>
    %85 = vector.broadcast %84 : vector<1x128xf32> to vector<8x128xf32>
    %86 = arith.subf %80, %85 : vector<8x128xf32>
    %87 = arith.mulf %86, %86 : vector<8x128xf32>
    %cst_32 = arith.constant dense<0.000000e+00> : vector<128xf32>
    %88 = vector.multi_reduction <add>, %87, %cst_32 [0] : vector<8x128xf32> to vector<128xf32>
    %89 = vector.shape_cast %88 : vector<128xf32> to vector<1x128xf32>
    %cst_33 = arith.constant 0.142857149 : f32
    %90 = vector.broadcast %cst_33 : f32 to vector<1x128xf32>
    %91 = arith.mulf %89, %90 : vector<1x128xf32>
    %cst_34 = arith.constant 9.99999996E-13 : f32
    %92 = vector.broadcast %cst_34 : f32 to vector<1x128xf32>
    %93 = arith.addf %91, %92 : vector<1x128xf32>
    %94 = math.rsqrt %93 : vector<1x128xf32>
    %95 = vector.broadcast %84 : vector<1x128xf32> to vector<8x128xf32>
    %96 = arith.subf %80, %95 : vector<8x128xf32>
    %97 = vector.broadcast %94 : vector<1x128xf32> to vector<8x128xf32>
    %98 = arith.mulf %96, %97 : vector<8x128xf32>
    %cst_35 = arith.constant 9.99999993E-9 : f32
    %99 = vector.broadcast %cst_35 : f32 to vector<8x128xf32>
    %100 = arith.addf %98, %99 : vector<8x128xf32>
    %101 = arith.negf %100 : vector<8x128xf32>
    %102 = math.exp %101 : vector<8x128xf32>
    %cst_36 = arith.constant 1.000000e+00 : f32
    %103 = vector.broadcast %cst_36 : f32 to vector<8x128xf32>
    %104 = arith.addf %103, %102 : vector<8x128xf32>
    %105 = arith.divf %103, %104 : vector<8x128xf32>
    %106 = arith.mulf %80, %105 : vector<8x128xf32>
    %107 = vector.broadcast %42 : f32 to vector<8x128xf32>
    %108 = arith.mulf %107, %80 : vector<8x128xf32>
    %cst_37 = arith.constant 1.000000e+00 : f32
    %109 = vector.broadcast %cst_37 : f32 to vector<8x128xf32>
    %110 = arith.subf %109, %105 : vector<8x128xf32>
    %111 = arith.mulf %108, %110 : vector<8x128xf32>
    %112 = arith.addf %106, %111 : vector<8x128xf32>
    %113 = vector.broadcast %39 : vector<1x128xf32> to vector<8x128xf32>
    %114 = arith.mulf %112, %113 : vector<8x128xf32>
    %cst_38 = arith.constant dense<0.000000e+00> : vector<8xf32>
    %115 = vector.multi_reduction <add>, %114, %cst_38 [1] : vector<8x128xf32> to vector<8xf32>
    %116 = vector.shape_cast %115 : vector<8xf32> to vector<8x1xf32>
    %117 = vector.broadcast %40 : f32 to vector<8x1xf32>
    %118 = arith.addf %116, %117 : vector<8x1xf32>
    %119 = arith.negf %118 : vector<8x1xf32>
    %120 = math.exp %119 : vector<8x1xf32>
    %cst_39 = arith.constant 1.000000e+00 : f32
    %121 = vector.broadcast %cst_39 : f32 to vector<8x1xf32>
    %122 = arith.addf %121, %120 : vector<8x1xf32>
    %123 = arith.divf %121, %122 : vector<8x1xf32>
    %c0_40 = arith.constant 0 : index
    %c0_41 = arith.constant 0 : index
    %124 = vector.load %arg6[%c0_40, %c0_41] : memref<8x1xf32, #tpu.memory_space<vmem>>, vector<8x1xf32>
    tpu.vector_store %arg6[%c0_40, %c0_41], %123 {strides = array<i32>} : memref<8x1xf32, #tpu.memory_space<vmem>>, vector<8x1xf32>,
    return
  }
}

</mosaic_0001>

<bundles_post_ra>
// kernel: tpu_custom_call.1
= control target key start
LH: loop header
LB: loop body
LE: loop exit
PB: predicated region body
PF: predicated region fallthrough
CT: control target
= control target key end

     0   :  { %11 = vsyncpa [#allocation3], 0  ;;  %s848_s0 = inlined_call_operand.vmem [shape: s32[32,8], index: 0, kind: input, shape index: {}]   ;;  %s849_s1 = inlined_call_operand.vmem [shape: s32[8,128], index: 1, kind: input, shape index: {}]   ;;  %s850_s2 = inlined_call_operand.vmem [shape: f32[8,16], index: 2, kind: input, shape index: {}]   ;;  %s851_s3 = inlined_call_operand.vmem [shape: f32[8,128], index: 3, kind: input, shape index: {}]   ;;  %s852_s4 = inlined_call_operand.hbm [shape: f32[456,256], index: 4, kind: input, shape index: {}]   ;;  %s853_s5 = inlined_call_operand.vmem [shape: f32[3], index: 5, kind: input, shape index: {}]   ;;  %s854_s6 = inlined_call_operand.vmem [shape: f32[8,1], index: 6, kind: output, shape index: {}]  }
   0x1   :  { %12 = vsyncpa [#allocation4], 0  ;;  %s732_s21 = smov [#allocation2]   ;;  %s39_s25 = sshll.u32 %s853_s5, 4  ;;  %s40_s25 = int_to_ptr.vmem [resolvable:$true] %s39_s25 }
   0x2   :  { %s26_s22 = sshll.u32 %s732_s21, 4  ;;  %s694_s28 = scalar_lea.hbm %s852_s4, 14592  ;;  %s27_s22 = int_to_ptr.vmem [resolvable:$true] %s26_s22 }
   0x3   :  { %p695_p0 = scmp.ne.s32.totalorder %s852_s4, %s694_s28  ;;  %p698_p1 = scmp.lt.u32.totalorder %s694_s28, %s852_s4 }
   0x5   :  { %p700_p2 = pnand %p698_p1, %p695_p0 }
   0x7   :  { %703 = shalt.err (!%p700_p2)
}
   0x8   :  { %s704_s9 = scalar_lea.vmem %s27_s22, 14592  ;;  %p709_p4 = scmp.lt.s32.totalorder %s27_s22, %s27_s22 }
   0x9   :  { %p705_p3 = scmp.ne.s32.totalorder %s27_s22, %s704_s9  ;;  %p710_p5 = scmp.lt.s32.totalorder %s704_s9, %s704_s9 }
   0xb   :  { %p711_p6 = por %p710_p5, %p709_p4 }
   0xd   :  { %p712_p7 = pnand %p711_p6, %p705_p3 }
   0xf   :  { %715 = shalt.err (!%p712_p7)
}
  0x10   :  { %s733_s5 = smov 256   ;;  %s734_s10 = smov 16  }
  0x11   :  { %32 = dma.hbm_to_vmem [thread:$0]  %s852_s4, 14592, %s27_s22, [#allocation3], %s733_s5, %s733_s5, %s734_s10  }
  0x12   :  { %s716_s13 = scalar_lea.vmem %s40_s25, 16  ;;  %p721_p9 = scmp.lt.s32.totalorder %s40_s25, %s40_s25 }
  0x13   :  { %p717_p8 = scmp.ne.s32.totalorder %s40_s25, %s716_s13  ;;  %p722_p10 = scmp.lt.s32.totalorder %s716_s13, %s716_s13 }
  0x15   :  { %p723_p11 = por %p722_p10, %p721_p9 }
  0x17   :  { %p724_p12 = pnand %p723_p11, %p717_p8 }
  0x19   :  { %727 = shalt.err (!%p724_p12)
}
  0x1a   :  { %s735_s14 = smov [#allocation5]  }
  0x1b   :  { %42 = dma.vmem_to_smem %s40_s25, 16, %s735_s14, [#allocation4]  }
  0x1c   :  { %728 = dma.done.wait [#allocation3], 14592  }
  0x1d   :  { %729 = vsyncadd [#allocation3], 4294952704 }
  0x1e   :  { %730 = dma.done.wait [#allocation4], 16  }
  0x1f   :  { %731 = vsyncadd [#allocation4], 4294967280 }
  0x20   :  { %49 = sfence }
  0x21   :  { %v50_v0 = vld [vmem:[%s848_s0] sm:$0xff]  ;;  %v52_v1 = vld [vmem:[%s848_s0 + $0x10] sm:$0xff]  ;;  %v51_v2 = vld [vmem:[%s848_s0 + $0x8] sm:$0xff]  ;;  %vm86_vm1 = vcmask 64512   ;;  %s737_s24 = smov 24   ;;  %s738_s25 = smov 48  }
  0x22   :  { %v54_v3 = vcvt.s32.f32 %v50_v0  ;;  %v56_v4 = vcvt.s32.f32 %v52_v1  ;;  %v55_v5 = vcvt.s32.f32 %v51_v2  ;;  %v53_v6 = vld [vmem:[%s848_s0 + $0x18] sm:$0xff]  ;;  %v169_v56 = vld [vmem:[#allocation2 + $0x8] sm:$0xff]  ;;  %v168_v58 = vld [vmem:[#allocation2] sm:$0xff]  ;;  %s740_s26 = smov 40   ;;  %vm166_vm6 = vcmask 392192   ;;  %s522_s29 = sld [smem:[#allocation5 + $0x2]] }
  0x23   :  { %v57_v7 = vcvt.s32.f32 %v53_v6  ;;  %v171_v57 = vld [vmem:[#allocation2 + $0x18] sm:$0xff]  ;;  %v170_v60 = vld [vmem:[#allocation2 + $0x10] sm:$0xff]  ;;  %v173_v61 = vld [vmem:[#allocation2 + $0x28] sm:$0xff]  ;;  %vm158_vm7 = vcmask 130048   ;;  %vm160_vm8 = vcmask 195584   ;;  %vm162_vm9 = vcmask 261120  }
  0x24   :  { %v62_v8 = vmax.f32 %v54_v3, 0.0  ;;  %v64_v9 = vmax.f32 %v56_v4, 0.0  ;;  %v63_v10 = vmax.f32 %v55_v5, 0.0  ;;  %vm58_vm0 = vcmp.lt.f32.partialorder %v54_v3, 0.0  ;;  %v175_v62 = vld [vmem:[#allocation2 + $0x38] sm:$0xff]  ;;  %v172_v1 = vld [vmem:[#allocation2 + $0x20] sm:$0xff] }
  0x25   :  { %v65_v11 = vmax.f32 %v57_v7, 0.0  ;;  %vm60_vm2 = vcmp.lt.f32.partialorder %v56_v4, 0.0  ;;  %vm59_vm3 = vcmp.lt.f32.partialorder %v55_v5, 0.0  ;;  %vm61_vm4 = vcmp.lt.f32.partialorder %v57_v7, 0.0  ;;  %v174_v2 = vld [vmem:[#allocation2 + $0x30] sm:$0xff]  ;;  %v177_v3 = vld [vmem:[#allocation2 + $0x48] sm:$0xff] }
  0x26   :  { %v66_v12 = vadd.f32 1.0, %v62_v8  ;;  %v68_v13 = vadd.f32 1.0, %v64_v9  ;;  %v67_v14 = vadd.f32 1.0, %v63_v10  ;;  %v563_v59 = vpack.c.bf16 %v171_v57, %v169_v56  ;;  %v179_v4 = vld [vmem:[#allocation2 + $0x58] sm:$0xff]  ;;  %v176_v7 = vld [vmem:[#allocation2 + $0x40] sm:$0xff]  ;;  %v178_v8 = vld [vmem:[#allocation2 + $0x50] sm:$0xff] }
  0x27   :  { %v69_v15 = vadd.f32 1.0, %v65_v11  ;;  %v565_v63 = vpack.c.bf16 %v170_v60, %v168_v58  ;;  %v567_v0 = vpack.c.bf16 %v175_v62, %v173_v61  ;;  %v569_v5 = vpack.c.bf16 %v174_v2, %v172_v1  ;;  %v181_v9 = vld [vmem:[#allocation2 + $0x68] sm:$0xff]  ;;  %v183_v10 = vld [vmem:[#allocation2 + $0x78] sm:$0xff]  ;;  %v204_v56 = vld [vmem:[#allocation2 + $0x120] sm:$0xff]  ;;  %s248_s30 = sld [smem:[#allocation5]] }
  0x28   :  { %648 = vlog2.f32 %v66_v12  ;;  %564 = vmatprep.subr.bf16.mxu0 %v563_v59  ;;  %v571_v6 = vpack.c.bf16 %v179_v4, %v177_v3  ;;  %v573_v11 = vpack.c.bf16 %v178_v8, %v176_v7  ;;  %v575_v12 = vpack.c.bf16 %v183_v10, %v181_v9  ;;  %v206_v58 = vld [vmem:[#allocation2 + $0x130] sm:$0xff]  ;;  %v209_v61 = vld [vmem:[#allocation2 + $0x148] sm:$0xff]  ;;  %v211_v62 = vld [vmem:[#allocation2 + $0x158] sm:$0xff] }
  0x29   :  { %650 = vlog2.f32 %v68_v13  ;;  %566 = vmatpush1.bf16.msra.mxu0 %v565_v63  ;;  %v180_v13 = vld [vmem:[#allocation2 + $0x60] sm:$0xff]  ;;  %v601_v59 = vpack.c.bf16 %v206_v58, %v204_v56  ;;  %v210_v1 = vld [vmem:[#allocation2 + $0x150] sm:$0xff]  ;;  %v736_v4 = vmov 0.0   ;;  %vm164_vm10 = vcmask 326656  }
  0x2a   :  { %652 = vlog2.f32 %v67_v14  ;;  %568 = vmatprep.subr.bf16.mxu0 %v567_v0  ;;  %v182_v14 = vld [vmem:[#allocation2 + $0x70] sm:$0xff]  ;;  %v208_v63 = vld [vmem:[#allocation2 + $0x140] sm:$0xff]  ;;  %v603_v0 = vpack.c.bf16 %v211_v62, %v209_v61  ;;  %vm512_vm11 = vcmask 7168  }
  0x2b   :  { %654 = vlog2.f32 %v69_v15  ;;  %v185_v15 = vld [vmem:[#allocation2 + $0x88] sm:$0xff]  ;;  %v131_v3 = vld [vmem:[%s851_s3] sm:$0xff]  ;;  %s739_s3 = smov 32   ;;  %v239_v56 = vld [vmem:[#allocation2 + $0x310] sm:$0xff] }
  0x2c   :  { %v240_v61 = vld [vmem:[#allocation2 + $0x320] sm:$0xff]  ;;  %v241_v62 = vld [vmem:[#allocation2 + $0x330] sm:$0xff] }
  0x2d   :  { %570 = vmatpush1.bf16.msra.mxu0 %v569_v5 }
  0x2e   :  { %572 = vmatprep.subr.bf16.mxu0 %v571_v6  ;;  %v605_v6 = vpack.c.bf16 %v210_v1, %v208_v63  ;;  %v224_v1 = vld [vmem:[#allocation2 + $0x220] sm:$0xff] }
  0x31   :  { %574 = vmatpush1.bf16.msra.mxu0 %v573_v11 }
  0x32   :  { %v649_v16 = vpop.eup %648  ;;  %576 = vmatprep.subr.bf16.mxu0 %v575_v12 }
  0x33   :  { %v651_v17 = vpop.eup %650  ;;  %v71_v18 = vmul.f32 0.6931472, %v649_v16  ;;  %v187_v16 = vld [vmem:[#allocation2 + $0x98] sm:$0xff] }
  0x34   :  { %v653_v19 = vpop.eup %652  ;;  %v75_v20 = vmul.f32 0.6931472, %v651_v17  ;;  %v577_v17 = vpack.c.bf16 %v182_v14, %v180_v13 }
  0x35   :  { %v655_v21 = vpop.eup %654  ;;  %v78_v22 = vmul.f32 1.25, %v71_v18  ;;  %v73_v23 = vmul.f32 0.6931472, %v653_v19  ;;  %v579_v18 = vpack.c.bf16 %v187_v16, %v185_v15  ;;  %v184_v19 = vld [vmem:[#allocation2 + $0x80] sm:$0xff] }
  0x36   :  { %v80_v24 = vmul.f32 1.25, %v75_v20  ;;  %v77_v25 = vmul.f32 0.6931472, %v655_v21  ;;  %v186_v20 = vld [vmem:[#allocation2 + $0x90] sm:$0xff]  ;;  %v189_v21 = vld [vmem:[#allocation2 + $0xa8] sm:$0xff]  ;;  %578 = vmatpush1.bf16.msra.mxu0 %v577_v17 }
  0x37   :  { %v82_v26 = vsel %vm58_vm0, -1e+30, %v78_v22  ;;  %v79_v27 = vmul.f32 1.25, %v73_v23  ;;  %v191_v22 = vld [vmem:[#allocation2 + $0xb8] sm:$0xff]  ;;  %v581_v23 = vpack.c.bf16 %v186_v20, %v184_v19  ;;  %580 = vmatprep.subr.bf16.mxu0 %v579_v18 }
  0x38   :  { %v87_v28 = vsel %vm86_vm1, %v82_v26, -inf  ;;  %v84_v29 = vsel %vm60_vm2, -1e+30, %v80_v24  ;;  %v81_v30 = vmul.f32 1.25, %v77_v25  ;;  %v583_v24 = vpack.c.bf16 %v191_v22, %v189_v21  ;;  %v188_v25 = vld [vmem:[#allocation2 + $0xa0] sm:$0xff] }
  0x39   :  { %88 = vmax.xlane.f32.xlu0 %v87_v28  ;;  %v93_v31 = vsel %vm86_vm1, %v84_v29, -inf  ;;  %v83_v32 = vsel %vm59_vm3, -1e+30, %v79_v27  ;;  %v193_v27 = vld [vmem:[#allocation2 + $0xc8] sm:$0xff]  ;;  %v195_v28 = vld [vmem:[#allocation2 + $0xd8] sm:$0xff]  ;;  %v228_v22 = vld [vmem:[#allocation2 + $0x260] sm:$0xff] }
  0x3a   :  { %94 = vmax.xlane.f32.xlu1 %v93_v31  ;;  %v90_v33 = vsel %vm86_vm1, %v83_v32, -inf  ;;  %v85_v34 = vsel %vm61_vm4, -1e+30, %v81_v30  ;;  %582 = vmatpush1.bf16.msra.mxu0 %v581_v23  ;;  %v587_v30 = vpack.c.bf16 %v195_v28, %v193_v27  ;;  %v192_v31 = vld [vmem:[#allocation2 + $0xc0] sm:$0xff]  ;;  %v229_v23 = vld [vmem:[#allocation2 + $0x270] sm:$0xff] }
  0x3b   :  { %v96_v35 = vsel %vm86_vm1, %v85_v34, -inf  ;;  %584 = vmatprep.subr.bf16.mxu0 %v583_v24  ;;  %v607_v24 = vpack.c.bf16 %v229_v23, %v228_v22  ;;  %v230_v28 = vld [vmem:[#allocation2 + $0x280] sm:$0xff] }
  0x3d   :  { %91 = vmax.xlane.f32.xlu0 %v90_v33  ;;  %v197_v33 = vld [vmem:[#allocation2 + $0xe8] sm:$0xff]  ;;  %608 = vmatprep.subr.bf16.mxu1 %v607_v24 }
  0x3e   :  { %97 = vmax.xlane.f32.xlu1 %v96_v35 }
  0xc6   :  { %v89_v36 = vpop.xlane.xlu0 %88 }
  0xc7   :  { %v99_v37 = vsub.f32 %v82_v26, %v89_v36  ;;  %v95_v38 = vpop.xlane.xlu1 %94  ;;  %v190_v26 = vld [vmem:[#allocation2 + $0xb0] sm:$0xff] }
  0xc8   :  { %v101_v39 = vsub.f32 %v84_v29, %v95_v38  ;;  %v585_v29 = vpack.c.bf16 %v190_v26, %v188_v25  ;;  %v198_v38 = vld [vmem:[#allocation2 + $0xf0] sm:$0xff]  ;;  %v212_v25 = vld [vmem:[#allocation2 + $0x160] sm:$0xff] }
  0xc9   :  { %v103_v40 = vmul.f32 1.442695, %v99_v37  ;;  %v196_v37 = vld [vmem:[#allocation2 + $0xe0] sm:$0xff]  ;;  %v213_v26 = vld [vmem:[#allocation2 + $0x170] sm:$0xff] }
  0xca   :  { %v107_v41 = vmul.f32 1.442695, %v101_v39  ;;  %v92_v42 = vpop.xlane.xlu0 %91  ;;  %586 = vmatpush1.bf16.msra.mxu0 %v585_v29  ;;  %v593_v39 = vpack.c.bf16 %v198_v38, %v196_v37  ;;  %v609_v27 = vpack.c.bf16 %v213_v26, %v212_v25  ;;  %v231_v29 = vld [vmem:[#allocation2 + $0x290] sm:$0xff]  ;;  %v216_v37 = vld [vmem:[#allocation2 + $0x1a0] sm:$0xff] }
  0xcb   :  { %656 = vpow2.f32 %v103_v40  ;;  %v100_v43 = vsub.f32 %v83_v32, %v92_v42  ;;  %v98_v44 = vpop.xlane.xlu1 %97  ;;  %v194_v32 = vld [vmem:[#allocation2 + $0xd0] sm:$0xff]  ;;  %588 = vmatprep.subr.bf16.mxu0 %v587_v30  ;;  %v203_v42 = vld [vmem:[#allocation2 + $0x118] sm:$0xff]  ;;  %v214_v30 = vld [vmem:[#allocation2 + $0x180] sm:$0xff] }
  0xcc   :  { %658 = vpow2.f32 %v107_v41  ;;  %v102_v45 = vsub.f32 %v85_v34, %v98_v44  ;;  %v199_v34 = vld [vmem:[#allocation2 + $0xf8] sm:$0xff]  ;;  %v589_v35 = vpack.c.bf16 %v194_v32, %v192_v31  ;;  %v201_v41 = vld [vmem:[#allocation2 + $0x108] sm:$0xff]  ;;  %v611_v31 = vpack.c.bf16 %v231_v29, %v230_v28  ;;  %v215_v32 = vld [vmem:[#allocation2 + $0x190] sm:$0xff]  ;;  %610 = vmatpush3.bf16.msra.mxu1 %v609_v27 }
  0xcd   :  { %v105_v46 = vmul.f32 1.442695, %v100_v43  ;;  %v591_v36 = vpack.c.bf16 %v199_v34, %v197_v33  ;;  %v200_v43 = vld [vmem:[#allocation2 + $0x100] sm:$0xff]  ;;  %v595_v44 = vpack.c.bf16 %v203_v42, %v201_v41  ;;  %v233_v34 = vld [vmem:[#allocation2 + $0x2b0] sm:$0xff] }
  0xce   :  { %v109_v47 = vmul.f32 1.442695, %v102_v45  ;;  %590 = vmatpush1.bf16.msra.mxu0 %v589_v35  ;;  %v202_v45 = vld [vmem:[#allocation2 + $0x110] sm:$0xff]  ;;  %v232_v33 = vld [vmem:[#allocation2 + $0x2a0] sm:$0xff]  ;;  %v613_v35 = vpack.c.bf16 %v215_v32, %v214_v30  ;;  %612 = vmatprep.subr.bf16.mxu1 %v611_v31 }
  0xcf   :  { %660 = vpow2.f32 %v105_v46  ;;  %592 = vmatprep.subr.bf16.mxu0 %v591_v36  ;;  %v597_v46 = vpack.c.bf16 %v202_v45, %v200_v43  ;;  %v615_v36 = vpack.c.bf16 %v233_v34, %v232_v33  ;;  %v217_v38 = vld [vmem:[#allocation2 + $0x1b0] sm:$0xff]  ;;  %v218_v43 = vld [vmem:[#allocation2 + $0x1c0] sm:$0xff] }
  0xd0   :  { %662 = vpow2.f32 %v109_v47  ;;  %614 = vmatpush3.bf16.msra.mxu1 %v613_v35  ;;  %v617_v41 = vpack.c.bf16 %v217_v38, %v216_v37  ;;  %v236_v45 = vld [vmem:[#allocation2 + $0x2e0] sm:$0xff] }
  0xd1   :  { %616 = vmatprep.subr.bf16.mxu1 %v615_v36 }
  0xd2   :  { %594 = vmatpush1.bf16.msra.mxu0 %v593_v39  ;;  %v234_v39 = vld [vmem:[#allocation2 + $0x2c0] sm:$0xff] }
  0xd3   :  { %596 = vmatprep.subr.bf16.mxu0 %v595_v44  ;;  %v219_v44 = vld [vmem:[#allocation2 + $0x1d0] sm:$0xff] }
  0xd4   :  { %618 = vmatpush3.bf16.msra.mxu1 %v617_v41 }
  0xd5   :  { %v808_v48 = vpop.eup %656 }
  0xd6   :  { %v810_v49 = vpop.eup %658  ;;  %v111_v50 = vsel %vm86_vm1, %v808_v48, 0.0  ;;  %598 = vmatpush1.bf16.msra.mxu0 %v597_v46  ;;  %v237_v46 = vld [vmem:[#allocation2 + $0x2f0] sm:$0xff] }
  0xd7   :  { %112 = vadd.xlane.f32.xlu0 %v111_v50  ;;  %v117_v51 = vsel %vm86_vm1, %v810_v49, 0.0 }
  0xd9   :  { %v816_v52 = vpop.eup %660 }
  0xda   :  { %v818_v53 = vpop.eup %662  ;;  %v114_v54 = vsel %vm86_vm1, %v816_v52, 0.0 }
  0xdb   :  { %118 = vadd.xlane.f32.xlu0 %v117_v51  ;;  %115 = vadd.xlane.f32.xlu1 %v114_v54  ;;  %v120_v55 = vsel %vm86_vm1, %v818_v53, 0.0  ;;  %v132_v51 = vld [vmem:[%s849_s1] sm:$0xff]  ;;  %v205_v54 = vld [vmem:[#allocation2 + $0x128] sm:$0xff] }
  0xdc   :  { %vm133_vm5 = vcmp.gt.s32.totalorder %v132_v51, 0  ;;  %v220_v51 = vld [vmem:[#allocation2 + $0x1e0] sm:$0xff] }
  0xdd   :  { %v520_v5 = vsel %vm133_vm5, 1.0, %v736_v4  ;;  %v243_v4 = vld [vmem:[#allocation2 + $0x350] sm:$0xff] }
  0xde   :  { %v136_v8 = vmul.f32 %v520_v5, %v131_v3  ;;  %v242_v3 = vld [vmem:[#allocation2 + $0x340] sm:$0xff] }
  0xdf   :  { %121 = vadd.xlane.f32.xlu1 %v120_v55  ;;  %v207_v55 = vld [vmem:[#allocation2 + $0x138] sm:$0xff] }
  0xe0   :  { %v599_v57 = vpack.c.bf16 %v207_v55, %v205_v54  ;;  %v221_v54 = vld [vmem:[#allocation2 + $0x1f0] sm:$0xff]  ;;  %v238_v55 = vld [vmem:[#allocation2 + $0x300] sm:$0xff] }
  0xe1   :  { %v627_v58 = vpack.c.bf16 %v239_v56, %v238_v55 }
  0xe2   :  { %600 = vmatprep.subr.bf16.mxu0 %v599_v57  ;;  %v625_v57 = vpack.c.bf16 %v221_v54, %v220_v51 }
  0xe3   :  { %602 = vmatpush1.bf16.msra.mxu0 %v601_v59  ;;  %v222_v59 = vld [vmem:[#allocation2 + $0x200] sm:$0xff] }
  0xe4   :  { %604 = vmatprep.subr.bf16.mxu0 %v603_v0  ;;  %v631_v0 = vpack.c.bf16 %v241_v62, %v240_v61 }
  0xe7   :  { %606 = vmatpush1.bf16.msra.mxu0 %v605_v6  ;;  %v635_v6 = vpack.c.bf16 %v243_v4, %v242_v3 }
 0x164   :  { %v113_v40 = vpop.xlane.xlu0 %112 }
 0x165   :  { %664 = vrcp.f32 %v113_v40  ;;  %v235_v40 = vld [vmem:[#allocation2 + $0x2d0] sm:$0xff] }
 0x166   :  { %v619_v42 = vpack.c.bf16 %v235_v40, %v234_v39 }
 0x168   :  { %v116_v47 = vpop.xlane.xlu1 %115  ;;  %v119_v50 = vpop.xlane.xlu0 %118  ;;  %620 = vmatprep.subr.bf16.mxu1 %v619_v42 }
 0x169   :  { %666 = vrcp.f32 %v116_v47  ;;  %v621_v47 = vpack.c.bf16 %v219_v44, %v218_v43 }
 0x16a   :  { %668 = vrcp.f32 %v119_v50  ;;  %v623_v50 = vpack.c.bf16 %v237_v46, %v236_v45 }
 0x16b   :  { %622 = vmatpush3.bf16.msra.mxu1 %v621_v47 }
 0x16c   :  { %v122_v60 = vpop.xlane.xlu1 %121  ;;  %624 = vmatprep.subr.bf16.mxu1 %v623_v50 }
 0x16d   :  { %670 = vrcp.f32 %v122_v60  ;;  %v223_v60 = vld [vmem:[#allocation2 + $0x210] sm:$0xff] }
 0x16e   :  { %v629_v63 = vpack.c.bf16 %v223_v60, %v222_v59 }
 0x16f   :  { %v665_v2 = vpop.eup %664  ;;  %626 = vmatpush3.bf16.msra.mxu1 %v625_v57 }
 0x170   :  { %v124_v7 = vmul.f32 %v665_v2, %v808_v48  ;;  %628 = vmatprep.subr.bf16.mxu1 %v627_v58  ;;  %v225_v2 = vld [vmem:[#allocation2 + $0x230] sm:$0xff] }
 0x171   :  { %v633_v5 = vpack.c.bf16 %v225_v2, %v224_v1 }
 0x172   :  { %139 = vrot.lane.b32.xlu0 %v124_v7, %s734_s10  ;;  %v226_v7 = vld [vmem:[#allocation2 + $0x240] sm:$0xff] }
 0x173   :  { %v667_v9 = vpop.eup %666  ;;  %630 = vmatpush3.bf16.msra.mxu1 %v629_v63 }
 0x174   :  { %v126_v10 = vmul.f32 %v667_v9, %v816_v52  ;;  %v669_v11 = vpop.eup %668  ;;  %v137_v52 = vld [vmem:[%s850_s2] sm:$0xff]  ;;  %632 = vmatprep.subr.bf16.mxu1 %v631_v0  ;;  %s521_s2 = sld [smem:[#allocation5 + $0x1]] }
 0x175   :  { %v128_v12 = vmul.f32 %v669_v11, %v810_v49 }
 0x176   :  { %143 = vrot.lane.b32.xlu1 %v126_v10, %s737_s24  ;;  %155 = vrot.lane.b32.xlu0 %v136_v8, %s738_s25  ;;  %v227_v8 = vld [vmem:[#allocation2 + $0x250] sm:$0xff]  ;;  %v252_v10 = vlaneseq }
 0x177   :  { %v671_v13 = vpop.eup %670  ;;  %634 = vmatpush3.bf16.msra.mxu1 %v633_v5  ;;  %v637_v9 = vpack.c.bf16 %v227_v8, %v226_v7 }
 0x178   :  { %v130_v48 = vmul.f32 %v671_v13, %v818_v53  ;;  %636 = vmatprep.subr.bf16.mxu1 %v635_v6  ;;  %v253_v11 = vshrl.u32 %v252_v10, 7  ;;  %v245_v13 = vld [vmem:[#allocation2 + $0x360] ss:$8 sm:$0x3] }
 0x17a   :  { %147 = vrot.lane.b32.xlu1 %v128_v12, %s739_s3  ;;  %v254_v12 = vsub.s32 0, %v253_v11  ;;  %v390_v3 = vstv %s521_s2 }
 0x17b   :  { %638 = vmatpush3.bf16.msra.mxu1 %v637_v9 }
 0x17e   :  { %151 = vrot.lane.b32.xlu1 %v130_v48, %s740_s26  ;;  %v258_v48 = vsub.s32 1, %v253_v11 }
 0x1e4   :  { %v140_v14 = vpop.permute.xlu0 %139 }
 0x1e5   :  { %v159_v49 = vsel %vm158_vm7, %v137_v52, %v140_v14  ;;  %v255_v14 = vrot.slane %v245_v13, %v254_v12 }
 0x1e8   :  { %v144_v15 = vpop.permute.xlu1 %143  ;;  %v156_v16 = vpop.permute.xlu0 %155 }
 0x1e9   :  { %523 = vmatprep.mubr.msk.f32.mxu0 %vm166_vm6, %v156_v16  ;;  %v161_v18 = vsel %vm160_vm8, %v159_v49, %v144_v15  ;;  %v259_v15 = vrot.slane %v245_v13, %v258_v48 }
 0x1ec   :  { %v148_v17 = vpop.permute.xlu1 %147 }
 0x1ed   :  { %v163_v19 = vsel %vm162_vm9, %v161_v18, %v148_v17 }
 0x1f0   :  { %v152_v53 = vpop.permute.xlu1 %151 }
 0x1f1   :  { %v165_v20 = vsel %vm164_vm10, %v163_v19, %v152_v53 }
 0x1f2   :  { %v167_v21 = vsel %vm166_vm6, %v165_v20, %v156_v16 }
 0x1f3   :  { %329 = vmatmul.mubr.f32.vlgmr.msra.gmra.mrb[0].mxu0 %v167_v21 }
 0x2c6   :  { %v330_v16 = vpop.f32.mrb[0].mxu0 }
 0x2c7   :  { %v838_v52 = vadd.f32 %v330_v16, %v255_v14  ;;  %v332_v17 = vpop.f32.mrb[1].mxu0  ;;  %v246_v16 = vld [vmem:[#allocation2 + $0x370] ss:$0 sm:$0xff] }
 0x2c8   :  { %v333_v49 = vadd.f32 %v332_v17, %v259_v15 }
 0x2c9   :  { %v335_v18 = vrot.slane %v838_v52, 4  ;;  %v391_v6 = vmul.f32 %v390_v3, %v838_v52 }
 0x2ca   :  { %v341_v19 = vrot.slane %v333_v49, 4  ;;  %v392_v8 = vmul.f32 %v390_v3, %v333_v49 }
 0x2cb   :  { %v336_v53 = vadd.f32 %v335_v18, %v838_v52 }
 0x2cc   :  { %v342_v20 = vadd.f32 %v341_v19, %v333_v49 }
 0x2cd   :  { %v337_v21 = vrot.slane %v336_v53, 2 }
 0x2ce   :  { %v343_v22 = vrot.slane %v342_v20, 2 }
 0x2cf   :  { %v338_v23 = vadd.f32 %v337_v21, %v336_v53 }
 0x2d0   :  { %v344_v24 = vadd.f32 %v343_v22, %v342_v20 }
 0x2d1   :  { %v339_v25 = vrot.slane %v338_v23, 1 }
 0x2d2   :  { %v345_v26 = vrot.slane %v344_v24, 1 }
 0x2d3   :  { %v340_v27 = vadd.f32 %v339_v25, %v338_v23 }
 0x2d4   :  { %v346_v28 = vadd.f32 %v345_v26, %v344_v24 }
 0x2d5   :  { %v348_v29 = vmul.f32 0.125, %v340_v27 }
 0x2d6   :  { %v349_v30 = vmul.f32 0.125, %v346_v28 }
 0x2d7   :  { %v350_v31 = vsub.f32 %v838_v52, %v348_v29 }
 0x2d8   :  { %v351_v32 = vsub.f32 %v333_v49, %v349_v30 }
 0x2d9   :  { %v352_v33 = vmul.f32 %v350_v31, %v350_v31 }
 0x2da   :  { %v353_v34 = vmul.f32 %v351_v32, %v351_v32 }
 0x2db   :  { %v354_v35 = vrot.slane %v352_v33, 4 }
 0x2dc   :  { %v360_v36 = vrot.slane %v353_v34, 4 }
 0x2dd   :  { %v355_v37 = vadd.f32 %v354_v35, %v352_v33 }
 0x2de   :  { %v361_v38 = vadd.f32 %v360_v36, %v353_v34 }
 0x2df   :  { %v356_v39 = vrot.slane %v355_v37, 2 }
 0x2e0   :  { %v362_v40 = vrot.slane %v361_v38, 2 }
 0x2e1   :  { %v357_v41 = vadd.f32 %v356_v39, %v355_v37 }
 0x2e2   :  { %v363_v42 = vadd.f32 %v362_v40, %v361_v38  ;;  %v496_v40 = vstv %s522_s29 }
 0x2e3   :  { %v358_v43 = vrot.slane %v357_v41, 1 }
 0x2e4   :  { %v364_v44 = vrot.slane %v363_v42, 1 }
 0x2e5   :  { %v359_v45 = vadd.f32 %v358_v43, %v357_v41 }
 0x2e6   :  { %v365_v46 = vadd.f32 %v364_v44, %v363_v42 }
 0x2e7   :  { %v366_v47 = vmul.f32 0.14285715, %v359_v45 }
 0x2e8   :  { %v367_v50 = vmul.f32 0.14285715, %v365_v46  ;;  %v247_v46 = vld [vmem:[#allocation2 + $0x380] ss:$0 sm:$0xff] }
 0x2e9   :  { %v368_v51 = vadd.f32 1e-12, %v366_v47 }
 0x2ea   :  { %v369_v54 = vadd.f32 1e-12, %v367_v50 }
 0x2eb   :  { %672 = vrsqrt.f32 %v368_v51  ;;  %v504_v51 = vstv %s248_s30 }
 0x2ec   :  { %674 = vrsqrt.f32 %v369_v54 }
 0x2f5   :  { %v673_v55 = vpop.eup %672 }
 0x2f6   :  { %v675_v56 = vpop.eup %674  ;;  %v372_v57 = vmul.f32 %v673_v55, %v350_v31 }
 0x2f7   :  { %v373_v58 = vmul.f32 %v675_v56, %v351_v32 }
 0x2f8   :  { %v374_v59 = vadd.f32 1e-08, %v372_v57 }
 0x2f9   :  { %v375_v60 = vadd.f32 1e-08, %v373_v58 }
 0x2fa   :  { %v524_v61 = vmul.f32 -1.442695, %v374_v59 }
 0x2fb   :  { %v525_v62 = vmul.f32 -1.442695, %v375_v60 }
 0x2fc   :  { %676 = vpow2.f32 %v524_v61 }
 0x2fd   :  { %678 = vpow2.f32 %v525_v62 }
 0x306   :  { %v677_v63 = vpop.eup %676 }
 0x307   :  { %v679_v0 = vpop.eup %678  ;;  %v382_v1 = vadd.f32 1.0, %v677_v63 }
 0x308   :  { %v383_v2 = vadd.f32 1.0, %v679_v0 }
 0x309   :  { %680 = vrcp.f32 %v382_v1 }
 0x30a   :  { %682 = vrcp.f32 %v383_v2 }
 0x313   :  { %v681_v4 = vpop.eup %680 }
 0x314   :  { %v683_v5 = vpop.eup %682  ;;  %v393_v7 = vsub.f32 1.0, %v681_v4  ;;  %v388_v13 = vmul.f32 %v681_v4, %v838_v52 }
 0x315   :  { %v394_v9 = vsub.f32 1.0, %v683_v5  ;;  %v389_v11 = vmul.f32 %v683_v5, %v333_v49 }
 0x316   :  { %v395_v10 = vmul.f32 %v393_v7, %v391_v6 }
 0x317   :  { %v396_v12 = vmul.f32 %v394_v9, %v392_v8 }
 0x318   :  { %v397_v14 = vadd.f32 %v395_v10, %v388_v13 }
 0x319   :  { %v398_v48 = vadd.f32 %v396_v12, %v389_v11 }
 0x31b   :  { %463 = vmatprep.mubr.f32.mxu1 %v398_v48 }
 0x31c   :  { %464 = vmatmul.mubr.f32.vlgmr.msra.gmra.mrb[0].mxu1 %v397_v14 }
 0x3ef   :  { %v560_v15 = vpop.f32.mrb[0].mxu1 }
 0x3f0   :  { %v561_v17 = vpop.f32.mrb[1].mxu1 }
 0x3f1   :  { %v562_v18 = vadd.f32 %v561_v17, %v560_v15 }
 0x3f3   :  { %v466_v19 = vadd.f32 %v562_v18, %v246_v16 }
 0x3f5   :  { %v469_v53 = vrot.slane %v466_v19, 4  ;;  %v497_v42 = vmul.f32 %v496_v40, %v466_v19 }
 0x3f7   :  { %v470_v20 = vadd.f32 %v469_v53, %v466_v19 }
 0x3f9   :  { %v471_v21 = vrot.slane %v470_v20, 2 }
 0x3fb   :  { %v472_v22 = vadd.f32 %v471_v21, %v470_v20 }
 0x3fd   :  { %v473_v23 = vrot.slane %v472_v22, 1 }
 0x3ff   :  { %v474_v24 = vadd.f32 %v473_v23, %v472_v22 }
 0x401   :  { %v475_v25 = vmul.f32 0.125, %v474_v24 }
 0x403   :  { %v476_v49 = vsub.f32 %v466_v19, %v475_v25 }
 0x405   :  { %v477_v26 = vmul.f32 %v476_v49, %v476_v49 }
 0x407   :  { %v478_v27 = vrot.slane %v477_v26, 4 }
 0x409   :  { %v479_v52 = vadd.f32 %v478_v27, %v477_v26 }
 0x40b   :  { %v480_v28 = vrot.slane %v479_v52, 2 }
 0x40d   :  { %v481_v29 = vadd.f32 %v480_v28, %v479_v52 }
 0x40f   :  { %v482_v30 = vrot.slane %v481_v29, 1 }
 0x411   :  { %v483_v31 = vadd.f32 %v482_v30, %v481_v29 }
 0x413   :  { %v484_v32 = vmul.f32 0.14285715, %v483_v31 }
 0x415   :  { %v485_v33 = vadd.f32 1e-12, %v484_v32 }
 0x417   :  { %684 = vrsqrt.f32 %v485_v33 }
 0x421   :  { %v685_v34 = vpop.eup %684 }
 0x422   :  { %v487_v35 = vmul.f32 %v685_v34, %v476_v49 }
 0x424   :  { %v488_v36 = vadd.f32 1e-08, %v487_v35 }
 0x426   :  { %v526_v37 = vmul.f32 -1.442695, %v488_v36 }
 0x428   :  { %686 = vpow2.f32 %v526_v37 }
 0x432   :  { %v687_v38 = vpop.eup %686 }
 0x433   :  { %v492_v39 = vadd.f32 1.0, %v687_v38 }
 0x435   :  { %688 = vrcp.f32 %v492_v39 }
 0x43f   :  { %v689_v41 = vpop.eup %688 }
 0x440   :  { %v498_v43 = vsub.f32 1.0, %v689_v41  ;;  %v495_v44 = vmul.f32 %v689_v41, %v466_v19 }
 0x442   :  { %v499_v45 = vmul.f32 %v498_v43, %v497_v42 }
 0x444   :  { %v500_v47 = vadd.f32 %v499_v45, %v495_v44 }
 0x446   :  { %v501_v50 = vmul.f32 %v500_v47, %v247_v46 }
 0x448   :  { %502 = vadd.xlane.f32.xlu1 %v501_v50 }
 0x4d5   :  { %v503_v54 = vpop.xlane.xlu1 %502 }
 0x4d6   :  { %v505_v55 = vadd.f32 %v504_v51, %v503_v54 }
 0x4d8   :  { %v527_v56 = vmul.f32 -1.442695, %v505_v55 }
 0x4da   :  { %690 = vpow2.f32 %v527_v56 }
 0x4e4   :  { %v691_v57 = vpop.eup %690 }
 0x4e5   :  { %v509_v58 = vadd.f32 1.0, %v691_v57 }
 0x4e7   :  { %692 = vrcp.f32 %v509_v58 }
 0x4f1   :  { %v693_v59 = vpop.eup %692 }
 0x4f2   :  { %513 = vst.msk [vmem:[%s854_s6] sm:$0xff] %vm512_vm11, %v693_v59 }
 0x4f3   :  { %518 = vsyncpa [#allocation3], 1 }
 0x4f4   :  { %519 = vsyncpa [#allocation4], 1 }

</bundles_post_ra>
